<compile_context>
chip_gen: v7x
topology: tpu7x:2x2x1
jax: 0.10.0
libtpu: 0.0.40
codegen_flags: <defaults>
</compile_context>

<pallas_src>
import jax
import jax.numpy as jnp
from jax.experimental import pallas as pl
from jax.experimental.pallas import tpu as pltpu


def _make_se_kernel(n_chunks, tb_chunk, hw, unroll):
    inv_hw = 1.0 / float(hw)

    def kernel(x_ref, w1t_ref, b1_ref, w2t_ref, b2_ref, o_ref, acc_ref):
        # x_ref / o_ref: (TB, C, HW) with TB = n_chunks * tb_chunk.
        # acc_ref: (n_chunks, tb_chunk, C) fp32 scratch (pooled sums, then gate).
        tb = n_chunks * tb_chunk
        c = x_ref.shape[1]

        # --- pass 1: fp32-accumulated global average pool, streamed by chunk.
        def pool_body(i, carry):
            xc = x_ref[pl.ds(i * tb_chunk, tb_chunk)]             # (tbc, C, HW)
            acc_ref[i] = jnp.sum(xc, axis=-1, dtype=jnp.float32)  # (tbc, C)
            return carry

        jax.lax.fori_loop(0, n_chunks, pool_body, 0, unroll=unroll)

        # --- excitation MLP (tiny, fp32): FC -> ReLU -> FC -> sigmoid.
        y = acc_ref[...].reshape(tb, c) * jnp.float32(inv_hw)     # (TB, C)
        h = jnp.dot(y, w1t_ref[...], preferred_element_type=jnp.float32)
        h = jnp.maximum(h + b1_ref[...], 0.0)                     # (TB, hidden)
        s = jnp.dot(h, w2t_ref[...], preferred_element_type=jnp.float32)
        gate = jax.nn.sigmoid(s + b2_ref[...])                    # (TB, C) fp32
        acc_ref[...] = gate.reshape(n_chunks, tb_chunk, c)        # reuse scratch

        # --- pass 2: broadcast the channel gate and store, streamed by chunk.
        def scale_body(i, carry):
            sl = pl.ds(i * tb_chunk, tb_chunk)
            g = acc_ref[i].astype(o_ref.dtype)[:, :, None]        # (tbc, C, 1)
            o_ref[sl] = (x_ref[sl] * g).astype(o_ref.dtype)
            return carry

        jax.lax.fori_loop(0, n_chunks, scale_body, 0, unroll=unroll)

    return kernel


def _round_up(v, m):
    return -(-v // m) * m


def _padded_slab_bytes(rows, cols, itemsize):
    """Padded VMEM footprint of a (rows, cols) slab (sublane/lane rounding)."""
    sub = max(8, 32 // itemsize)           # 8 for f32, 16 for bf16, 32 for int8
    return _round_up(rows, sub) * _round_up(cols, 128) * itemsize


def _vmem_budget_bytes():
    """Scoped-VMEM budget by TPU generation (conservative when unknown)."""
    try:
        kind = jax.devices()[0].device_kind.lower()
    except Exception:
        kind = ""
    if "v5" in kind or "v6" in kind:       # 128 MiB physical VMEM
        return 96 << 20
    return 48 << 20                        # v7x (64 MiB physical) / unknown


def se_layer(x, w1, b1, w2, b2, *, target_tile_bytes=8 << 20,
             chunk_bytes=512 << 10, min_grid_steps=4):
    """SELayer forward.  x: (B, C, H, W).  w1: (hidden, C), b1: (hidden,),
    w2: (C, hidden), b2: (C,)  (PyTorch nn.Linear layouts)."""
    B, C, H, W = x.shape
    HW = H * W
    hidden = w1.shape[0]
    itemsize = x.dtype.itemsize

    # Tiny FC weights: pre-transpose and pre-cast to fp32 once in the wrapper.
    w1t = w1.T.astype(jnp.float32)                       # (C, hidden)
    w2t = w2.T.astype(jnp.float32)                       # (hidden, C)
    b1_2d = b1.reshape(1, hidden).astype(jnp.float32)
    b2_2d = b2.reshape(1, C).astype(jnp.float32)

    # --- padded VMEM footprints ---------------------------------------------
    per_b_pad = _padded_slab_bytes(C, HW, itemsize)      # one image block
    weight_pad = 2 * (_padded_slab_bytes(C, hidden, 4) +  # double-buffered
                      _padded_slab_bytes(1, hidden, 4) +
                      _padded_slab_bytes(hidden, C, 4) +
                      _padded_slab_bytes(1, C, 4))
    margin = 4 << 20
    budget = _vmem_budget_bytes()

    # --- choose TB from the VMEM budget (in+out double-buffered = 4x tile),
    #     the target DMA tile size, and >= min_grid_steps grid steps. ---------
    tb_fit = max(1, (budget - weight_pad - margin) // (4 * per_b_pad))
    tb_target = max(1, target_tile_bytes // per_b_pad)
    tb_grid = max(1, B // min_grid_steps)
    tb_cap = int(max(1, min(tb_fit, tb_target, tb_grid, B)))

    tb_div = 1
    for d in range(1, tb_cap + 1):                       # largest divisor <= cap
        if B % d == 0:
            tb_div = d
    if 4 * tb_div >= 3 * tb_cap:                         # divisor close to cap
        TB = tb_div
        num_blocks = B // TB
    else:                                                # awkward B: ragged tail
        TB = tb_cap
        num_blocks = pl.cdiv(B, TB)

    # --- in-kernel streaming chunk over the batch rows of each block ---------
    tb_chunk = int(max(1, min(TB, chunk_bytes // per_b_pad)))
    while TB % tb_chunk:
        tb_chunk -= 1
    n_chunks = TB // tb_chunk
    unroll = n_chunks <= 8

    # --- explicit scoped-VMEM limit from the padded footprint ----------------
    tile_pad = TB * per_b_pad
    scratch_pad = n_chunks * _padded_slab_bytes(tb_chunk, C, 4)
    vmem_needed = 4 * tile_pad + weight_pad + scratch_pad + margin
    vmem_limit = int(min(budget, max(vmem_needed, 16 << 20)))

    kernel = _make_se_kernel(n_chunks, tb_chunk, HW, unroll)

    cost = pl.CostEstimate(
        flops=int(3 * B * C * HW + 4 * B * C * hidden),
        transcendentals=int(B * C),
        bytes_accessed=int(2 * x.size * itemsize +
                           4 * (w1.size + w2.size + b1.size + b2.size)),
    )

    out = pl.pallas_call(
        kernel,
        out_shape=jax.ShapeDtypeStruct((B, C, HW), x.dtype),
        grid_spec=pltpu.PrefetchScalarGridSpec(
            num_scalar_prefetch=0,
            grid=(num_blocks,),
            in_specs=[
                pl.BlockSpec((TB, C, HW), lambda b: (b, 0, 0)),
                pl.BlockSpec((C, hidden), lambda b: (0, 0)),
                pl.BlockSpec((1, hidden), lambda b: (0, 0)),
                pl.BlockSpec((hidden, C), lambda b: (0, 0)),
                pl.BlockSpec((1, C), lambda b: (0, 0)),
            ],
            out_specs=pl.BlockSpec((TB, C, HW), lambda b: (b, 0, 0)),
            scratch_shapes=[pltpu.VMEM((n_chunks, tb_chunk, C), jnp.float32)],
        ),
        compiler_params=pltpu.CompilerParams(
            dimension_semantics=("parallel",),
            vmem_limit_bytes=vmem_limit,
        ),
        cost_estimate=cost,
    )(x.reshape(B, C, HW), w1t, b1_2d, w2t, b2_2d)

    return out.reshape(B, C, H, W)


def se_layer_ref(x, w1, b1, w2, b2):
    """Pure-JAX reference mirroring the PyTorch forward."""
    y = jnp.mean(x, axis=(2, 3))                          # (B, C)
    y = jnp.maximum(y @ w1.T + b1, 0.0)                   # (B, hidden)
    y = jax.nn.sigmoid(y @ w2.T + b2)                     # (B, C)
    return x * y[:, :, None, None]


def _run_case(key, B, C, H, W, reduction):
    hidden = max(1, C // reduction)
    kx, k1, k2, k3, k4 = jax.random.split(key, 5)
    x = jax.random.normal(kx, (B, C, H, W), dtype=jnp.float32)
    # PyTorch Linear shapes: weight (out, in), bias (out,)
    w1 = jax.random.normal(k1, (hidden, C), dtype=jnp.float32) * 0.1
    b1 = jax.random.normal(k2, (hidden,), dtype=jnp.float32) * 0.1
    w2 = jax.random.normal(k3, (C, hidden), dtype=jnp.float32) * 0.1
    b2 = jax.random.normal(k4, (C,), dtype=jnp.float32) * 0.1

    out = jax.block_until_ready(se_layer(x, w1, b1, w2, b2))
    ref = se_layer_ref(x, w1, b1, w2, b2)
    assert out.shape == x.shape
    assert jnp.allclose(out, ref, atol=1e-5, rtol=1e-5), (
        f"mismatch vs reference for shape {(B, C, H, W)}")


if __name__ == "__main__":
    key = jax.random.PRNGKey(0)
    k0, k1, k2 = jax.random.split(key, 3)

    # SELayer(channel=32, reduction=16) -> hidden=2, the module's default setup.
    _run_case(k0, B=2, C=32, H=16, W=16, reduction=16)
    # Larger batch: exercises the multi-step grid + in-kernel chunked streaming.
    _run_case(k1, B=16, C=256, H=16, W=16, reduction=16)
    # Awkward (prime) batch: exercises the ragged last block (pl.cdiv grid).
    _run_case(k2, B=13, C=32, H=16, W=16, reduction=4)

    print("KERNEL_OK")
</pallas_src>

<mosaic_0001>
module attributes {stable_mosaic.version = 11 : i64} {
  func.func @kernel(%arg0: i32, %arg1: memref<1x32x256xf32, #tpu.memory_space<vmem>>, %arg2: memref<32x2xf32, #tpu.memory_space<vmem>>, %arg3: memref<1x2xf32, #tpu.memory_space<vmem>>, %arg4: memref<2x32xf32, #tpu.memory_space<vmem>>, %arg5: memref<1x32xf32, #tpu.memory_space<vmem>>, %arg6: memref<1x32x256xf32, #tpu.memory_space<vmem>>, %arg7: memref<1x1x32xf32, #tpu.memory_space<vmem>>) attributes {dimension_semantics = [#tpu.dimension_semantics<parallel>], iteration_bounds = array<i64: 2>, scalar_prefetch = 0 : i64, scratch_operands = 1 : i64, tpu.core_type = #tpu.core_type<tc>, window_params = [{transform_indices = @transform_0, window_bounds = array<i64: 1, 32, 256>}, {pipeline_mode = #tpu.pipeline_mode<synchronous>, transform_indices = @transform_1, window_bounds = array<i64: 32, 2>}, {pipeline_mode = #tpu.pipeline_mode<synchronous>, transform_indices = @transform_2, window_bounds = array<i64: 1, 2>}, {pipeline_mode = #tpu.pipeline_mode<synchronous>, transform_indices = @transform_3, window_bounds = array<i64: 2, 32>}, {pipeline_mode = #tpu.pipeline_mode<synchronous>, transform_indices = @transform_4, window_bounds = array<i64: 1, 32>}, {transform_indices = @transform_5, window_bounds = array<i64: 1, 32, 256>}]} {
    %c0_i32 = arith.constant 0 : i32
    %c1_i32 = arith.constant 1 : i32
    %0 = arith.muli %c0_i32, %c1_i32 : i32
    %1 = arith.index_cast %0 : i32 to index
    %c0 = arith.constant 0 : index
    %c0_0 = arith.constant 0 : index
    %2 = vector.load %arg1[%1, %c0, %c0_0] : memref<1x32x256xf32, #tpu.memory_space<vmem>>, vector<1x32x256xf32>
    %cst = arith.constant dense<0.000000e+00> : vector<1x32xf32>
    %3 = vector.multi_reduction <add>, %2, %cst [2] : vector<1x32x256xf32> to vector<1x32xf32>
    %4 = arith.index_cast %c0_i32 : i32 to index
    %c0_1 = arith.constant 0 : index
    %c0_2 = arith.constant 0 : index
    %5 = vector.load %arg7[%4, %c0_1, %c0_2] : memref<1x1x32xf32, #tpu.memory_space<vmem>>, vector<1x1x32xf32>
    %6 = vector.shape_cast %5 : vector<1x1x32xf32> to vector<1x32xf32>
    %7 = vector.shape_cast %3 : vector<1x32xf32> to vector<1x1x32xf32>
    tpu.vector_store %arg7[%4, %c0_1, %c0_2], %7 {strides = array<i32>} : memref<1x1x32xf32, #tpu.memory_space<vmem>>, vector<1x1x32xf32>,
    %c1_i32_3 = arith.constant 1 : i32
    %c0_4 = arith.constant 0 : index
    %c0_5 = arith.constant 0 : index
    %c0_6 = arith.constant 0 : index
    %8 = vector.load %arg7[%c0_4, %c0_5, %c0_6] : memref<1x1x32xf32, #tpu.memory_space<vmem>>, vector<1x1x32xf32>
    %9 = vector.shape_cast %8 : vector<1x1x32xf32> to vector<1x32xf32>
    %cst_7 = arith.constant 3.906250e-03 : f32
    %10 = vector.broadcast %cst_7 : f32 to vector<1x32xf32>
    %11 = arith.mulf %9, %10 : vector<1x32xf32>
    %c0_8 = arith.constant 0 : index
    %c0_9 = arith.constant 0 : index
    %12 = vector.load %arg2[%c0_8, %c0_9] : memref<32x2xf32, #tpu.memory_space<vmem>>, vector<32x2xf32>
    %cst_10 = arith.constant dense<0.000000e+00> : vector<1x2xf32>
    %13 = tpu.matmul %11, %12, %cst_10 {dimension_numbers = #tpu.dot_dimension_numbers<[1], [0], [0], [1], [0, 0, 1, 1], [], []>} : vector<1x32xf32>, vector<32x2xf32>, vector<1x2xf32> -> vector<1x2xf32>
    %c0_11 = arith.constant 0 : index
    %c0_12 = arith.constant 0 : index
    %14 = vector.load %arg3[%c0_11, %c0_12] : memref<1x2xf32, #tpu.memory_space<vmem>>, vector<1x2xf32>
    %15 = arith.addf %13, %14 : vector<1x2xf32>
    %cst_13 = arith.constant 0.000000e+00 : f32
    %16 = vector.broadcast %cst_13 : f32 to vector<1x2xf32>
    %17 = arith.maximumf %15, %16 : vector<1x2xf32>
    %c0_14 = arith.constant 0 : index
    %c0_15 = arith.constant 0 : index
    %18 = vector.load %arg4[%c0_14, %c0_15] : memref<2x32xf32, #tpu.memory_space<vmem>>, vector<2x32xf32>
    %cst_16 = arith.constant dense<0.000000e+00> : vector<1x32xf32>
    %19 = tpu.matmul %17, %18, %cst_16 {dimension_numbers = #tpu.dot_dimension_numbers<[1], [0], [0], [1], [0, 0, 1, 1], [], []>} : vector<1x2xf32>, vector<2x32xf32>, vector<1x32xf32> -> vector<1x32xf32>
    %c0_17 = arith.constant 0 : index
    %c0_18 = arith.constant 0 : index
    %20 = vector.load %arg5[%c0_17, %c0_18] : memref<1x32xf32, #tpu.memory_space<vmem>>, vector<1x32xf32>
    %21 = arith.addf %19, %20 : vector<1x32xf32>
    %22 = arith.negf %21 : vector<1x32xf32>
    %23 = math.exp %22 : vector<1x32xf32>
    %cst_19 = arith.constant 1.000000e+00 : f32
    %24 = vector.broadcast %cst_19 : f32 to vector<1x32xf32>
    %25 = arith.addf %24, %23 : vector<1x32xf32>
    %26 = arith.divf %24, %25 : vector<1x32xf32>
    %27 = vector.shape_cast %26 : vector<1x32xf32> to vector<1x1x32xf32>
    %c0_20 = arith.constant 0 : index
    %c0_21 = arith.constant 0 : index
    %c0_22 = arith.constant 0 : index
    %28 = vector.load %arg7[%c0_20, %c0_21, %c0_22] : memref<1x1x32xf32, #tpu.memory_space<vmem>>, vector<1x1x32xf32>
    tpu.vector_store %arg7[%c0_20, %c0_21, %c0_22], %27 {strides = array<i32>} : memref<1x1x32xf32, #tpu.memory_space<vmem>>, vector<1x1x32xf32>,
    %c0_i32_23 = arith.constant 0 : i32
    %c1_i32_24 = arith.constant 1 : i32
    %29 = arith.muli %c0_i32_23, %c1_i32_24 : i32
    %30 = arith.index_cast %c0_i32_23 : i32 to index
    %c0_25 = arith.constant 0 : index
    %c0_26 = arith.constant 0 : index
    %31 = vector.load %arg7[%30, %c0_25, %c0_26] : memref<1x1x32xf32, #tpu.memory_space<vmem>>, vector<1x1x32xf32>
    %32 = vector.shape_cast %31 : vector<1x1x32xf32> to vector<1x32xf32>
    %33 = vector.shape_cast %32 : vector<1x32xf32> to vector<1x32x1xf32>
    %34 = arith.index_cast %29 : i32 to index
    %c0_27 = arith.constant 0 : index
    %c0_28 = arith.constant 0 : index
    %35 = vector.load %arg1[%34, %c0_27, %c0_28] : memref<1x32x256xf32, #tpu.memory_space<vmem>>, vector<1x32x256xf32>
    %36 = vector.broadcast %33 : vector<1x32x1xf32> to vector<1x32x256xf32>
    %37 = arith.mulf %35, %36 : vector<1x32x256xf32>
    %38 = arith.index_cast %29 : i32 to index
    %c0_29 = arith.constant 0 : index
    %c0_30 = arith.constant 0 : index
    %39 = vector.load %arg6[%38, %c0_29, %c0_30] : memref<1x32x256xf32, #tpu.memory_space<vmem>>, vector<1x32x256xf32>
    tpu.vector_store %arg6[%38, %c0_29, %c0_30], %37 {strides = array<i32>} : memref<1x32x256xf32, #tpu.memory_space<vmem>>, vector<1x32x256xf32>,
    %c1_i32_31 = arith.constant 1 : i32
    return
  }
  func.func @transform_0(%arg0: i32) -> (i32, i32, i32) {
    %c0_i32 = arith.constant 0 : i32
    %c0_i32_0 = arith.constant 0 : i32
    %c0_i32_1 = arith.constant 0 : i32
    return %arg0, %c0_i32, %c0_i32_0 : i32, i32, i32
  }
  func.func @transform_1(%arg0: i32) -> (i32, i32) {
    %c0_i32 = arith.constant 0 : i32
    %c0_i32_0 = arith.constant 0 : i32
    %c0_i32_1 = arith.constant 0 : i32
    return %c0_i32, %c0_i32_0 : i32, i32
  }
  func.func @transform_2(%arg0: i32) -> (i32, i32) {
    %c0_i32 = arith.constant 0 : i32
    %c0_i32_0 = arith.constant 0 : i32
    %c0_i32_1 = arith.constant 0 : i32
    return %c0_i32, %c0_i32_0 : i32, i32
  }
  func.func @transform_3(%arg0: i32) -> (i32, i32) {
    %c0_i32 = arith.constant 0 : i32
    %c0_i32_0 = arith.constant 0 : i32
    %c0_i32_1 = arith.constant 0 : i32
    return %c0_i32, %c0_i32_0 : i32, i32
  }
  func.func @transform_4(%arg0: i32) -> (i32, i32) {
    %c0_i32 = arith.constant 0 : i32
    %c0_i32_0 = arith.constant 0 : i32
    %c0_i32_1 = arith.constant 0 : i32
    return %c0_i32, %c0_i32_0 : i32, i32
  }
  func.func @transform_5(%arg0: i32) -> (i32, i32, i32) {
    %c0_i32 = arith.constant 0 : i32
    %c0_i32_0 = arith.constant 0 : i32
    %c0_i32_1 = arith.constant 0 : i32
    return %arg0, %c0_i32, %c0_i32_0 : i32, i32, i32
  }
}

</mosaic_0001>

<bundles_post_ra>
// kernel: tpu_custom_call.1
= control target key start
LH: loop header
LB: loop body
LE: loop exit
PB: predicated region body
PF: predicated region fallthrough
CT: control target
= control target key end

     0   :  { %10 = vsyncpa [#allocation4], 0  ;;  %s1062_s0 = inlined_call_operand.hbm [shape: f32[2,32,256], index: 0, kind: input, shape index: {}]   ;;  %s1063_s1 = inlined_call_operand.vmem [shape: f32[32,2], index: 1, kind: input, shape index: {}]   ;;  %s1064_s2 = inlined_call_operand.vmem [shape: f32[1,2], index: 2, kind: input, shape index: {}]   ;;  %s1065_s3 = inlined_call_operand.vmem [shape: f32[2,32], index: 3, kind: input, shape index: {}]   ;;  %s1066_s4 = inlined_call_operand.vmem [shape: f32[1,32], index: 4, kind: input, shape index: {}]   ;;  %s1067_s5 = inlined_call_operand.hbm [shape: f32[2,32,256], index: 5, kind: output, shape index: {}]  }
   0x1   :  { %12 = vsyncpa [#allocation4 + $0x1], 0 }
   0x2   :  { %13 = vsyncpa [#allocation5], 0 }
   0x3   :  { %15 = vsyncpa [#allocation5 + $0x1], 0  ;;  %s841_s18 = smov 0   ;;  %s843_s19 = smov 0  }
   0x4   :  { %s845_s20 = smov 0   ;;  %s847_s21 = smov 0  }
   0x5 LB: > { %s862_s22 = sadd.s32 4294967295, %s800_s21   ;;  %s597_s23 = sadd.s32 4294967294, %s800_s21   ;;  %s800_s21 = sphi %s847_s21, %s1080_s21   ;;  %s796_s20 = sphi %s845_s20, %s1079_s20   ;;  %s792_s19 = sphi %s843_s19, %s1078_s19   ;;  %s788_s18 = sphi %s841_s18, %s1077_s18  }
   0x6   : > { %s866_s24 = sadd.s32 1, %s800_s21   ;;  %s28_s25 = sadd.s32 1, %s796_s20 }
   0x7   : > { %s25_s26 = ssub.s32 %s800_s21, %s866_s24  ;;  %p35_p0 = scmp.ne.s32.totalorder %s796_s20, %s792_s19 }
   0x8   : > { %p26_p1 = scmp.eq.s32.totalorder %s25_s26, 0  ;;  %p36_p2 = scmp.eq.s32.totalorder %s800_s21, 0 }
   0x9   : > { %p41_p3 = scmp.ne.s32.totalorder %s792_s19, %s788_s18  ;;  %p42_p4 = scmp.eq.s32.totalorder %s862_s22, 0 }
   0xa   : > { %s878_s27 = scalar_select %p26_p1, %s796_s20, %s28_s25  }
   0xb   : > { %p880_p5 = por %p36_p2, %p35_p0  ;;  %p884_p6 = por %p42_p4, %p41_p3 }
   0xc   : > { %p149_p7 = scmp.eq.s32.totalorder %s862_s22, 1  ;;  %p155_p8 = scmp.eq.s32.totalorder %s597_s23, 1 }
   0xd   : > { %p659_p10 = scmp.lt.s32.totalorder %s800_s21, 2  ;;  %s187_s7 = sand.u32 1, %s796_s20  }
   0xe   : > { %p891_p11 = por %p149_p7, %p35_p0  ;;  %p895_p12 = por %p155_p8, %p41_p3 }
   0xf   : > { %s616_s8 = sshll.u32 %s800_s21, 10  ;;  %s600_s9 = sshll.u32 %s187_s7, 6 }
  0x10   : > { %s1071_s30 = scalar_select %p891_p11, 1, 0 }
  0x11   : > { %s1072_s6 = scalar_select %p895_p12, 1, 0 }
  0x12   : > { %s904_s12 = scalar_lea.hbm %s1062_s0, %s616_s8  ;;  %s191_s13 = scalar_lea.vmem [#allocation3], %s600_s9 }
  0x13   : > { %s198_s14 = sshll.u32 %s191_s13, 4  ;;  %p908_p13 = pnand %p659_p10, %p880_p5  ;;  %s912_s14 = int_to_ptr.vmem [resolvable:$true] %s198_s14 }
  0x14   : > { %s914_s16 = scalar_lea.sflag [#allocation4], %s187_s7  ;;  %s704_s17 = scalar_lea.hbm %s904_s12, 1024 }
  0x15   : > { %p705_p0 = scmp.ne.s32.totalorder %s904_s12, %s704_s17  ;;  %p706_p1 = pneg %p908_p13 }
  0x16   : > { %s709_s26 = scalar_lea.hbm %s1062_s0, 2048  ;;  %p710_p4 = scmp.lt.u32.totalorder %s904_s12, %s1062_s0 }
  0x17   : > { %p707_p2 = pnand %p706_p1, %p705_p0  ;;  %p711_p5 = scmp.lt.u32.totalorder %s709_s26, %s704_s17 }
  0x18   : > { %p713_p8 = scmp.lt.u32.totalorder %s704_s17, %s904_s12 }
  0x19   : > { %p708_p3 = pneg %p707_p2  ;;  %p712_p7 = por %p711_p5, %p710_p4 }
  0x1b   : > { %p714_p10 = por %p713_p8, %p712_p7 }
  0x1d   : > { %p715_p9 = pnand %p714_p10, %p708_p3 }
  0x1f   : > { %718 = shalt.err (!%p715_p9)
}
  0x20   : > { %s719_s7 = scalar_lea.vmem %s912_s14, 1024  ;;  %s802_s9 = smov [#allocation3]  }
  0x21   : > { %p720_p0 = scmp.ne.s32.totalorder %s912_s14, %s719_s7  ;;  %s724_s10 = sshll.u32 %s802_s9, 4  ;;  %s725_s10 = int_to_ptr.vmem [resolvable:$false] %s724_s10 }
  0x22   : > { %s726_s11 = scalar_lea.vmem %s725_s10, 2048  ;;  %p727_p11 = scmp.lt.s32.totalorder %s912_s14, %s725_s10 }
  0x23   : > { %p722_p2 = pnand %p720_p0, %p706_p1  ;;  %p728_p4 = scmp.lt.s32.totalorder %s726_s11, %s719_s7 }
  0x25   : > { %p723_p12 = pneg %p722_p2  ;;  %p729_p5 = por %p728_p4, %p727_p11 }
  0x27   : > { %p730_p7 = pnand %p729_p5, %p723_p12 }
  0x29   : > { %733 = shalt.err (!%p730_p7)
}
  0x2a   : > { %s803_s13 = smov 256   ;;  %s804_s17 = smov 16  }
  0x2b   : > { %654 = dma.hbm_to_vmem [thread:$0]  (!%p908_p13), %s904_s12, 1024, %s912_s14, %s914_s16, %s803_s13, %s803_s13, %s804_s17  }
  0x2c   : > { %p603_p9 = scmp.ge.s32.totalorder %s800_s21, 1  ;;  %p206_p1 = scmp.lt.s32.totalorder %s800_s21, 3 }
  0x2e   : > { %p207_p3 = pnand %p603_p9, %p206_p1 }
  0x2f   : > { %s945_s23 = sand.u32 (!%p207_p3), 1, %s792_s19  }
  0x30   : > { %210 = sbr.rel (%p207_p3) target bundleno = 824 (0x338), region = 40  ;;  %s604_s25 = sshll.u32 (!%p207_p3), %s945_s23, 6 }
  0x31   : > { %s213_s26 = scalar_lea.sflag (!%p207_p3), [#allocation4], %s945_s23  ;;  %s216_s28 = scalar_lea.vmem (!%p207_p3), [#allocation3], %s604_s25 }
  0x37   : > { %779 = dma.done.wait (%p884_p6), %s213_s26, 1024  }
  0x38   : > { %781 = vsyncadd (%p884_p6), %s213_s26, 4294966272  ;;  %v955_v0 = vld [vmem:[%s216_s28] sm:$0xff]  ;;  %v957_v1 = vld [vmem:[%s216_s28 + $0x8] sm:$0xff]  ;;  %v805_v15 = vmov 0.0|0.0   ;;  %vm806_vm0 = vmmov 0   ;;  %v807_v18 = vmov 0.0   ;;  %v267_v20 = vlaneseq }
  0x39   : > { %v959_v2 = vld [vmem:[%s216_s28 + $0x20] sm:$0xff]  ;;  %v251_v3 = vadd.f32 %v957_v1, %v955_v0  ;;  %v963_v4 = vld [vmem:[%s216_s28 + $0x28] sm:$0xff]  ;;  %v965_v5 = vld [vmem:[%s216_s28 + $0x10] sm:$0xff]  ;;  %641 = vmatprep.subr.bf16.mxu0 %v805_v15  ;;  %633 = vmatprep.mubr.msk.f32.mxu0 %vm806_vm0, %v807_v18  ;;  %vm278_vm1 = vcmask 130112   ;;  %vm285_vm2 = vcmask 195712   ;;  %vm292_vm3 = vcmask 261312  }
  0x3a   : > { %v967_v6 = vld [vmem:[%s216_s28 + $0x18] sm:$0xff]  ;;  %v257_v7 = vadd.f32 %v963_v4, %v959_v2  ;;  %v971_v8 = vld [vmem:[%s216_s28 + $0x30] sm:$0xff]  ;;  %v300_v13 = vld [vmem:[%s1063_s1 + $0x8] sm:$0xff]  ;;  %636 = vmatprep.subr.mxu1 %v807_v18  ;;  %638 = vmatprep.mubr.msk.f32.mxu1 %vm806_vm0, %v807_v18  ;;  %v268_v21 = vand.u32 127, %v267_v20  ;;  %v270_v22 = vshrl.u32 %v267_v20, 7  ;;  %vm295_vm4 = vcmask 253952  }
  0x3b   : > { %v973_v9 = vld [vmem:[%s216_s28 + $0x38] sm:$0xff]  ;;  %252 = vadd.xlane.f32.xlu0 %v251_v3  ;;  %v254_v10 = vadd.f32 %v967_v6, %v965_v5  ;;  %v301_v14 = vld [vmem:[%s1063_s1 + $0x10] sm:$0xff]  ;;  %vm304_vm5 = vcmask 261120   ;;  %vm385_vm6 = vcmask 1041408   ;;  %vm381_vm7 = vcmask 15360   ;;  %s242_s29 = scalar_lea.vmem [#allocation6], %s604_s25 }
  0x3c   : > { %258 = vadd.xlane.f32.xlu1 %v257_v7  ;;  %v260_v11 = vadd.f32 %v973_v9, %v971_v8  ;;  %v299_v12 = vld [vmem:[%s1063_s1] sm:$0xff]  ;;  %v302_v17 = vld [vmem:[%s1063_s1 + $0x18] sm:$0xff]  ;;  %v273_v23 = vadd.s32 4294967288, %v268_v21  ;;  %v280_v24 = vadd.s32 4294967280, %v268_v21  ;;  %v287_v25 = vadd.s32 4294967272, %v268_v21  ;;  %s524_s12 = sshll.u32 %s242_s29, 4  ;;  %s1011_s12 = int_to_ptr.vmem [resolvable:$true] %s524_s12 }
  0x3d   : > { %v642_v16 = vpack.c.bf16 %v300_v13, %v299_v12  ;;  %v645_v19 = vpack.c.bf16 %v302_v17, %v301_v14  ;;  %v271_v27 = vsub.s32 %v268_v21, %v270_v22  ;;  %v379_v43 = vld [vmem:[%s1065_s3] sm:$0x3]  ;;  %s617_s14 = sshll.u32 %s862_s22, 10  ;;  %s511_s22 = scalar_lea.sflag [#allocation5], %s945_s23 }
  0x3e   : > { %v276_v29 = vsub.s32 %v273_v23, %v270_v22  ;;  %v283_v30 = vsub.s32 %v280_v24, %v270_v22  ;;  %v290_v31 = vsub.s32 %v287_v25, %v270_v22  ;;  %637 = vmatpush3.msk.msra.mxu1 %vm385_vm6, %v379_v43  ;;  %v303_v44 = vld [vmem:[%s1064_s2] sm:$0x1]  ;;  %s1016_s16 = scalar_lea.hbm %s1067_s5, %s617_s14  ;;  %s734_s8 = scalar_lea.vmem %s1011_s12, 1024 }
  0x3f   : > { %255 = vadd.xlane.f32.xlu0 %v254_v10  ;;  %643 = vmatpush3.bf16.msra.mxu0 %v642_v16  ;;  %v380_v49 = vld [vmem:[%s1066_s4] sm:$0x1]  ;;  %p735_p6 = scmp.ne.s32.totalorder %s1011_s12, %s734_s8  ;;  %p1074_p11 = scmp.ne.s32.totalorder %s1071_s30, 0 }
  0x40   : > { %261 = vadd.xlane.f32.xlu1 %v260_v11  ;;  %644 = vmatprep.subr.bf16.mxu0 %v805_v15  ;;  %s808_s7 = smov [#allocation6]  }
  0x41   : > { %p736_p12 = pnand %p735_p6, %p1074_p11  ;;  %s738_s9 = sshll.u32 %s808_s7, 4  ;;  %s739_s9 = int_to_ptr.vmem [resolvable:$false] %s738_s9 }
  0x42   : > { %s740_s10 = scalar_lea.vmem %s739_s9, 2048  ;;  %p741_p8 = scmp.lt.s32.totalorder %s1011_s12, %s739_s9 }
  0x43   : > { %646 = vmatpush3.bf16.msra.mxu0 %v645_v19  ;;  %p737_p13 = pneg %p736_p12  ;;  %p742_p10 = scmp.lt.s32.totalorder %s740_s10, %s734_s8 }
  0x45   : > { %p743_p0 = por %p742_p10, %p741_p8 }
  0x47   : > { %p744_p2 = pnand %p743_p0, %p737_p13 }
  0xc8   : > { %v253_v26 = vpop.xlane.xlu0 %252 }
  0xc9   : > { %v259_v28 = vpop.xlane.xlu1 %258  ;;  %v272_v33 = vrot.slane %v253_v26, %v271_v27 }
  0xca   : > { %v284_v36 = vrot.slane %v259_v28, %v283_v30 }
  0xcc   : > { %v256_v32 = vpop.xlane.xlu0 %255 }
  0xcd   : > { %v277_v34 = vrot.slane %v256_v32, %v276_v29  ;;  %v262_v35 = vpop.xlane.xlu1 %261 }
  0xce   : > { %v291_v37 = vrot.slane %v262_v35, %v290_v31 }
  0xcf   : > { %v279_v38 = vsel %vm278_vm1, %v277_v34, %v272_v33 }
  0xd0   : > { %v286_v39 = vsel %vm285_vm2, %v284_v36, %v279_v38 }
  0xd1   : > { %v293_v40 = vsel %vm292_vm3, %v291_v37, %v286_v39 }
  0xd2   : > { %296 = vst.msk [vmem:[#allocation2] sm:$0x1] %vm295_vm4, %v293_v40 }
  0xd9   : > { %v297_v41 = vld [vmem:[#allocation2] sm:$0x1] }
  0xda   : > { %v298_v42 = vmul.f32 0.00390625, %v297_v41 }
  0xdc   : > { %634 = vmatmul.mubr.msk.f32.vlgmr.msra.gmra.mrb[0].mxu0 %vm304_vm5, %v298_v42 }
 0x1af   : > { %v374_v45 = vpop.f32.mrb[0].mxu0 }
 0x1b0   : > { %v375_v46 = vadd.f32 %v374_v45, %v303_v44  ;;  %v635_v47 = vpop.f32.mrb[1].mxu0 }
 0x1b2   : > { %v378_v48 = vmax.f32 %v375_v46, 0.0 }
 0x1b4   : > { %639 = vmatmul.mubr.msk.f32.vlgmr.msra.gmra.mrb[0].mxu1 %vm381_vm7, %v378_v48 }
 0x287   : > { %v455_v50 = vpop.f32.mrb[0].mxu1 }
 0x288   : > { %v456_v51 = vadd.f32 %v455_v50, %v380_v49  ;;  %v640_v52 = vpop.f32.mrb[1].mxu1 }
 0x28a   : > { %v609_v53 = vmul.f32 -1.442695, %v456_v51 }
 0x28c   : > { %700 = vpow2.f32 %v609_v53 }
 0x296   : > { %v701_v54 = vpop.eup %700 }
 0x297   : > { %v462_v55 = vadd.f32 1.0, %v701_v54 }
 0x299   : > { %702 = vrcp.f32 %v462_v55 }
 0x2a3   : > { %v703_v56 = vpop.eup %702 }
 0x2a4   : > { %465 = vst.msk [vmem:[#allocation2] sm:$0x1] %vm295_vm4, %v703_v56 }
 0x2ab   : > { %v610_v57 = vld [vmem:[#allocation2] ss:$0 sm:$0xff] }
 0x2ac   : > { %476 = vbcast.lane.b32.xlu1 %v610_v57, 264  ;;  %472 = vbcast.lane.b32.xlu0 %v610_v57, 256 }
 0x2b0   : > { %480 = vbcast.lane.b32.xlu1 %v610_v57, 272 }
 0x2b4   : > { %484 = vbcast.lane.b32.xlu1 %v610_v57, 280 }
 0x31e   : > { %v477_v58 = vpop.permute.xlu1 %476  ;;  %v473_v59 = vpop.permute.xlu0 %472 }
 0x31f   : > { %v496_v60 = vmul.f32 %v477_v58, %v965_v5  ;;  %v497_v61 = vmul.f32 %v477_v58, %v967_v6  ;;  %v494_v62 = vmul.f32 %v473_v59, %v955_v0  ;;  %v495_v63 = vmul.f32 %v473_v59, %v957_v1 }
 0x321   : > { %504 = vst [vmem:[%s242_s29 + $0x10] sm:$0xff] %v496_v60  ;;  %505 = vst [vmem:[%s242_s29 + $0x18] sm:$0xff] %v497_v61 }
 0x322   : > { %502 = vst [vmem:[%s242_s29] sm:$0xff] %v494_v62  ;;  %503 = vst [vmem:[%s242_s29 + $0x8] sm:$0xff] %v495_v63  ;;  %v481_v3 = vpop.permute.xlu1 %480 }
 0x323   : > { %v498_v7 = vmul.f32 %v481_v3, %v959_v2  ;;  %v499_v5 = vmul.f32 %v481_v3, %v963_v4 }
 0x325   : > { %506 = vst [vmem:[%s242_s29 + $0x20] sm:$0xff] %v498_v7  ;;  %507 = vst [vmem:[%s242_s29 + $0x28] sm:$0xff] %v499_v5 }
 0x326   : > { %v485_v0 = vpop.permute.xlu1 %484 }
 0x327   : > { %v500_v1 = vmul.f32 %v485_v0, %v971_v8  ;;  %v501_v2 = vmul.f32 %v485_v0, %v973_v9 }
 0x329   : > { %508 = vst [vmem:[%s242_s29 + $0x30] sm:$0xff] %v500_v1  ;;  %509 = vst [vmem:[%s242_s29 + $0x38] sm:$0xff] %v501_v2 }
 0x32a   : > { %747 = shalt.err (!%p744_p2)
}
 0x32b   : > { %s748_s11 = scalar_lea.hbm %s1016_s16, 1024  ;;  %s752_s26 = scalar_lea.hbm %s1067_s5, 2048 }
 0x32c   : > { %p749_p4 = scmp.ne.s32.totalorder %s1016_s16, %s748_s11  ;;  %p753_p9 = scmp.lt.u32.totalorder %s1016_s16, %s1067_s5 }
 0x32d   : > { %p754_p1 = scmp.lt.u32.totalorder %s752_s26, %s748_s11  ;;  %p756_p6 = scmp.lt.u32.totalorder %s748_s11, %s1016_s16 }
 0x32e   : > { %p750_p5 = pnand %p749_p4, %p1074_p11 }
 0x32f   : > { %p755_p3 = por %p754_p1, %p753_p9 }
 0x330   : > { %p751_p7 = pneg %p750_p5 }
 0x331   : > { %p757_p12 = por %p756_p6, %p755_p3 }
 0x333   : > { %p758_p13 = pnand %p757_p12, %p751_p7 }
 0x335   : > { %761 = shalt.err (!%p758_p13)
}
 0x336   : > { %s809_s14 = smov 256   ;;  %s810_s25 = smov 16  }
 0x337   : > { %649 = dma.vmem_to_hbm [thread:$0]  (%p1074_p11), %s1011_s12, 1024, %s1016_s16, %s511_s22, %s809_s14, %s809_s14, %s810_s25  }
 0x338 PF: > { %s539_s15 = sand.u32 1, %s788_s18   ;;  %p1075_p8 = scmp.ne.s32.totalorder %s1072_s6, 0 }
 0x339   : > { %p1076_p10 = scmp.ge.s32.totalorder %s800_s21, 2  ;;  %s540_s8 = scalar_lea.sflag [#allocation5], %s539_s15 }
 0x33b   : > { %p656_p0 = pnand %p1076_p10, %p1075_p8 }
 0x33d   : > { %783 = dma.done.wait (!%p656_p0), %s540_s8, 1024  }
 0x33e   : > { %785 = vsyncadd (!%p656_p0), %s540_s8, 4294966272  ;;  %p18_p2 = scmp.ge.s32.totalorder %s866_s24, 4   ;;  %s1077_s18 = smov %s792_s19 }
 0x33f   : > { %s1078_s19 = smov %s796_s20  ;;  %s1079_s20 = smov %s878_s27 }
 0x340   : > { %s1080_s21 = smov %s866_s24  ;;  %20 = sbr.rel (!%p18_p2) target bundleno = 5 (0x5), region = 85 }
 0x347   :  { %545 = vsyncpa [#allocation4], 1 }
 0x348   :  { %547 = vsyncpa [#allocation4 + $0x1], 1 }
 0x349   :  { %548 = vsyncpa [#allocation5], 1 }
 0x34a   :  { %550 = vsyncpa [#allocation5 + $0x1], 1 }

</bundles_post_ra>
